<compile_context>
chip_gen: v5e
topology: v5e:2x2
jax: 0.10.0
libtpu: 0.0.40
codegen_flags: <defaults>
</compile_context>

<pallas_src>
import functools

import jax
import jax.numpy as jnp
from jax.experimental import pallas as pl
from jax.experimental.pallas import tpu as pltpu


# ---------------------------------------------------------------------------
# Helpers
# ---------------------------------------------------------------------------
def _round_up(x, m):
    return ((x + m - 1) // m) * m


def _pick_tile(dim, max_tile, unit=128):
    """Largest multiple of `unit` that divides `dim` and is <= max_tile."""
    best = unit
    t = unit
    while t <= min(max_tile, dim):
        if dim % t == 0:
            best = t
        t += unit
    return best


def _pad2d(x, Mp, Np, dtype=jnp.float32):
    x = jnp.asarray(x, dtype)
    M, N = x.shape
    if M == Mp and N == Np:
        return x
    return jnp.zeros((Mp, Np), dtype).at[:M, :N].set(x)


def _pad_bias(b, Np):
    b = jnp.asarray(b, jnp.float32)
    N = b.shape[0]
    if N == Np:
        return b.reshape(1, Np)
    return jnp.zeros((1, Np), jnp.float32).at[0, :N].set(b)


# ---------------------------------------------------------------------------
# Kernel 1: tiled matmul + bias + optional ReLU, f32 scratch accumulation.
# ---------------------------------------------------------------------------
def _mm_kernel(x_ref, w_ref, b_ref, o_ref, acc_ref, *, apply_relu):
    k = pl.program_id(2)
    nk = pl.num_programs(2)
    prod = jnp.dot(x_ref[...], w_ref[...], preferred_element_type=jnp.float32)

    @pl.when(k == 0)
    def _():
        acc_ref[...] = prod                    # overwrite: no zero-init needed

    @pl.when(k != 0)
    def _():
        acc_ref[...] = acc_ref[...] + prod

    @pl.when(k == nk - 1)
    def _():
        out = acc_ref[...] + b_ref[...]
        if apply_relu:
            out = jnp.maximum(out, 0.0)
        o_ref[...] = out.astype(o_ref.dtype)


def pallas_matmul_padded(xp, wp, bp, relu=False, out_dtype=jnp.float32):
    """out = (relu)(xp @ wp + bp); xp/wp streamed as bf16, acc in f32 scratch.

    All dims of xp [Mp,Kp], wp [Kp,Np] must already be multiples of 128.
    """
    Mp, Kp = xp.shape
    Kp2, Np = wp.shape
    assert Kp == Kp2 and Mp % 128 == 0 and Kp % 128 == 0 and Np % 128 == 0
    xp = xp.astype(jnp.bfloat16)
    wp = wp.astype(jnp.bfloat16)
    bp = bp.astype(jnp.float32)

    tm = _pick_tile(Mp, 512)
    tn = _pick_tile(Np, 256)
    tk = _pick_tile(Kp, 1024)
    grid = (Mp // tm, Np // tn, Kp // tk)

    return pl.pallas_call(
        functools.partial(_mm_kernel, apply_relu=relu),
        out_shape=jax.ShapeDtypeStruct((Mp, Np), out_dtype),
        grid_spec=pltpu.PrefetchScalarGridSpec(
            num_scalar_prefetch=0,
            grid=grid,
            in_specs=[pl.BlockSpec((tm, tk), lambda i, j, k: (i, k)),
                      pl.BlockSpec((tk, tn), lambda i, j, k: (k, j)),
                      pl.BlockSpec((1, tn), lambda i, j, k: (0, j))],
            out_specs=pl.BlockSpec((tm, tn), lambda i, j, k: (i, j)),
            scratch_shapes=[pltpu.VMEM((tm, tn), jnp.float32)],
        ),
        compiler_params=pltpu.CompilerParams(
            dimension_semantics=("parallel", "parallel", "arbitrary"),
            vmem_limit_bytes=32 * 1024 * 1024),
    )(xp, wp, bp)


# ---------------------------------------------------------------------------
# Kernel 2: fused hyperedge aggregation + Linear:
#   Y = relu((ADD + A @ H) @ W + b)
#   A   [Mp, Kp]  incidence (bf16)        H [Kp, Ep] activations (bf16)
#   ADD [Mp, Ep]  residual/features       W [Ep, Ep], b [1, Ep]
# ---------------------------------------------------------------------------
def _agg_linear_kernel(a_ref, h_ref, add_ref, w_ref, b_ref, o_ref, acc_ref,
                       *, apply_relu):
    k = pl.program_id(1)
    nk = pl.num_programs(1)
    prod = jnp.dot(a_ref[...], h_ref[...], preferred_element_type=jnp.float32)

    @pl.when(k == 0)
    def _():
        acc_ref[...] = prod

    @pl.when(k != 0)
    def _():
        acc_ref[...] = acc_ref[...] + prod

    @pl.when(k == nk - 1)
    def _():
        s = (acc_ref[...] + add_ref[...].astype(jnp.float32)).astype(jnp.bfloat16)
        out = jnp.dot(s, w_ref[...], preferred_element_type=jnp.float32) + b_ref[...]
        if apply_relu:
            out = jnp.maximum(out, 0.0)
        o_ref[...] = out.astype(o_ref.dtype)


def fused_agg_linear(Ap, Hp, addp, Wp, bp, relu=True, out_dtype=jnp.bfloat16):
    Mp, Kp = Ap.shape
    Kp2, Ep = Hp.shape
    assert Kp == Kp2 and addp.shape == (Mp, Ep) and Wp.shape == (Ep, Ep)
    assert Mp % 128 == 0 and Kp % 128 == 0 and Ep % 128 == 0
    Ap = Ap.astype(jnp.bfloat16)
    Hp = Hp.astype(jnp.bfloat16)
    addp = addp.astype(jnp.bfloat16)
    Wp = Wp.astype(jnp.bfloat16)
    bp = bp.astype(jnp.float32)

    tm = _pick_tile(Mp, 512 if Ep <= 256 else 256)
    tk = _pick_tile(Kp, 512)
    grid = (Mp // tm, Kp // tk)

    return pl.pallas_call(
        functools.partial(_agg_linear_kernel, apply_relu=relu),
        out_shape=jax.ShapeDtypeStruct((Mp, Ep), out_dtype),
        grid_spec=pltpu.PrefetchScalarGridSpec(
            num_scalar_prefetch=0,
            grid=grid,
            in_specs=[pl.BlockSpec((tm, tk), lambda i, k: (i, k)),   # A
                      pl.BlockSpec((tk, Ep), lambda i, k: (k, 0)),   # H
                      pl.BlockSpec((tm, Ep), lambda i, k: (i, 0)),   # ADD
                      pl.BlockSpec((Ep, Ep), lambda i, k: (0, 0)),   # W
                      pl.BlockSpec((1, Ep), lambda i, k: (0, 0))],   # b
            out_specs=pl.BlockSpec((tm, Ep), lambda i, k: (i, 0)),
            scratch_shapes=[pltpu.VMEM((tm, Ep), jnp.float32)],
        ),
        compiler_params=pltpu.CompilerParams(
            dimension_semantics=("parallel", "arbitrary"),
            vmem_limit_bytes=32 * 1024 * 1024),
    )(Ap, Hp, addp, Wp, bp)


# ---------------------------------------------------------------------------
# Parameters (deterministic, PyTorch-Linear-style uniform init)
# ---------------------------------------------------------------------------
def _init_linear(key, fan_in, fan_out):
    kw, kb = jax.random.split(key)
    bound = 1.0 / float(fan_in) ** 0.5
    w = jax.random.uniform(kw, (fan_in, fan_out), jnp.float32, -bound, bound)
    b = jax.random.uniform(kb, (fan_out,), jnp.float32, -bound, bound)
    return w, b


def init_dehnn_params(key, num_layers, emb_dim, out_dim, node_dim, net_dim):
    keys = iter(jax.random.split(key, 3 * num_layers + 8))
    p = {}
    p['node_w'], p['node_b'] = _init_linear(next(keys), node_dim, emb_dim)
    p['net_w'], p['net_b'] = _init_linear(next(keys), net_dim, emb_dim)
    # torch.nn.init.constant_(self.vn_embedding.weight.data, 0)
    p['vn_embedding'] = jnp.zeros((1, emb_dim), jnp.float32)
    p['vn_mlp'] = [_init_linear(next(keys), emb_dim, emb_dim)
                   for _ in range(num_layers - 1)]
    p['conv_net'] = [_init_linear(next(keys), emb_dim, emb_dim)
                     for _ in range(num_layers)]
    p['conv_node'] = [_init_linear(next(keys), emb_dim, emb_dim)
                      for _ in range(num_layers)]
    p['fc1_w'], p['fc1_b'] = _init_linear(next(keys), (num_layers + 1) * emb_dim, 256)
    p['fc2_w'], p['fc2_b'] = _init_linear(next(keys), 256, out_dim)
    # TODO(synk): reference declares self.output = nn.Linear(node_dim, 1) but applies it
    # to nodes_cat with (num_layers+1)*emb_dim features; use the matching fan-in here.
    p['out_w'], p['out_b'] = _init_linear(next(keys), (num_layers + 1) * emb_dim, 1)
    return p


# ---------------------------------------------------------------------------
# Forward
# ---------------------------------------------------------------------------
def dehnn_forward(params, data, num_layers, emb_dim):
    node_features = data['node_features']
    net_features = data['net_features']
    src_index = data['edge_index_source_to_net']   # [2, E]: row=node id, col=net id
    sink_index = data['edge_index_sink_to_net']    # [2, E]: row=node id, col=net id
    batch = data['batch']
    num_vn = data['num_vn']
    num_nodes, node_dim = node_features.shape
    num_nets, net_dim = net_features.shape

    E = emb_dim
    Ep = _round_up(E, 128)
    NODESp = _round_up(num_nodes, 128)
    NETSp = _round_up(num_nets, 128)
    NDp = _round_up(node_dim, 128)
    NTp = _round_up(net_dim, 128)

    # ---- gcn_norm on sink->net edges (add_self_loops=False) ----
    # TODO(synk): PyG gcn_norm assumes a homogeneous id space; here the bipartite
    # symmetric normalisation deg_node^-1/2 * deg_net^-1/2 is used.
    row, col = sink_index[0], sink_index[1]
    deg_node = jnp.zeros((num_nodes,), jnp.float32).at[row].add(1.0)
    deg_net = jnp.zeros((num_nets,), jnp.float32).at[col].add(1.0)
    dinv_node = jnp.where(deg_node > 0, jax.lax.rsqrt(jnp.maximum(deg_node, 1e-12)), 0.0)
    dinv_net = jnp.where(deg_net > 0, jax.lax.rsqrt(jnp.maximum(deg_net, 1e-12)), 0.0)
    weight_sink = dinv_node[row] * dinv_net[col]
    # TODO(synk): dropout_edge(p=0.1) is stochastic training-time edge dropping; skipped (eval).

    # Dense incidence matrices, hoisted & pre-padded ONCE, streamed as bf16.
    # src + sink aggregations are only ever summed -> fuse into one matrix.
    A_src = jnp.zeros((num_nets, num_nodes), jnp.float32).at[
        src_index[1], src_index[0]].add(1.0)
    A_sink = jnp.zeros((num_nets, num_nodes), jnp.float32).at[
        col, row].add(weight_sink)
    A_comb_p = _pad2d(A_src + A_sink, NETSp, NODESp, jnp.bfloat16)    # node -> net
    A_sink_T_p = _pad2d(A_sink.T, NODESp, NETSp, jnp.bfloat16)        # net  -> node

    # Pre-padded conv weights / biases (hoisted out of the layer loop).
    conv_net = [(_pad2d(w, Ep, Ep, jnp.bfloat16), _pad_bias(b, Ep))
                for (w, b) in params['conv_net']]
    conv_node = [(_pad2d(w, Ep, Ep, jnp.bfloat16), _pad_bias(b, Ep))
                 for (w, b) in params['conv_node']]

    # global_mean_pool matrix P [num_vn, num_nodes] — tiny output, kept in XLA.
    P = jnp.zeros((num_vn, num_nodes), jnp.float32).at[
        batch, jnp.arange(num_nodes)].set(1.0)
    P = P / jnp.maximum(P.sum(axis=1, keepdims=True), 1.0)

    # Initial node / net encoders; activations live padded + bf16 for the whole loop.
    h_node0 = pallas_matmul_padded(
        _pad2d(node_features, NODESp, NDp),
        _pad2d(params['node_w'], NDp, Ep, jnp.bfloat16),
        _pad_bias(params['node_b'], Ep), relu=True,
        out_dtype=jnp.bfloat16)                               # [NODESp, Ep]
    h_net0 = pallas_matmul_padded(
        _pad2d(net_features, NETSp, NTp),
        _pad2d(params['net_w'], NTp, Ep, jnp.bfloat16),
        _pad_bias(params['net_b'], Ep), relu=True,
        out_dtype=jnp.bfloat16)                               # [NETSp, Ep]

    node_list = [h_node0]
    net_list = [h_net0]

    vn_emb = jnp.broadcast_to(params['vn_embedding'][0], (num_vn, E))
    batch_p = jnp.zeros((NODESp,), jnp.int32).at[:num_nodes].set(batch)

    for layer in range(num_layers):
        vn_pad = jnp.zeros((num_vn, Ep), jnp.float32).at[:, :E].set(vn_emb)
        h_in = (node_list[layer].astype(jnp.float32)
                + vn_pad[batch_p]).astype(jnp.bfloat16)       # [NODESp, Ep]
        node_list[layer] = h_in

        # ---- DEHNN conv layer ----
        # TODO(synk): DEHNN_conv_layer is not defined in the reference; implemented as
        # node->net aggregation (source sum + gcn-normalised sink sum via one combined
        # incidence matmul) + Linear+ReLU, followed by net->node back-projection +
        # Linear+ReLU, each as a single fused Pallas kernel.
        cw, cb = conv_net[layer]
        h_net = fused_agg_linear(A_comb_p, h_in, net_list[layer], cw, cb,
                                 relu=True)                   # [NETSp, Ep]
        nw, nb = conv_node[layer]
        h_inst = fused_agg_linear(A_sink_T_p, h_net, h_in, nw, nb,
                                  relu=True)                  # [NODESp, Ep]

        node_list.append(h_inst)
        net_list.append(h_net)

        if layer < num_layers - 1:
            # global_mean_pool + vn_mlp: M = num_vn (tiny) -> plain XLA, not Pallas.
            pooled = P @ node_list[layer][:num_nodes, :E].astype(jnp.float32)
            temp = pooled + vn_emb
            vw, vb = params['vn_mlp'][layer]
            vn_emb = vn_emb + jnp.maximum(temp @ vw + vb, 0.0)

    # Concatenate the real feature columns; rows stay padded to NODESp.
    nodes_cat = jnp.concatenate([h[:, :E] for h in node_list], axis=1)    # [NODESp, (L+1)*E]
    F = nodes_cat.shape[1]
    Fp = _round_up(F, 128)

    # Fused head: stream nodes_cat ONCE for both fc1 (wide) and the 1-wide output head.
    fc1_dim = params['fc1_b'].shape[0]
    w_head = jnp.concatenate([params['fc1_w'], params['out_w']], axis=1)  # [F, fc1_dim+1]
    b_head = jnp.concatenate([params['fc1_b'], params['out_b']])
    Nhp = _round_up(w_head.shape[1], 128)
    head = pallas_matmul_padded(
        _pad2d(nodes_cat, NODESp, Fp, jnp.bfloat16),
        _pad2d(w_head, Fp, Nhp, jnp.bfloat16),
        _pad_bias(b_head, Nhp), relu=False)                   # [NODESp, Nhp] f32

    h_fc1 = jnp.maximum(head[:num_nodes, :fc1_dim], 0.0)      # relu(fc1(nodes_cat))
    ret = head[:num_nodes, fc1_dim:fc1_dim + 1]               # output head (no relu)
    # fc2: K=256, N=out_dim (tiny) -> plain XLA.
    nodes = jnp.maximum(h_fc1 @ params['fc2_w'] + params['fc2_b'], 0.0)
    return nodes, ret


# ---------------------------------------------------------------------------
if __name__ == "__main__":
    num_layers, emb_dim, out_dim = 3, 32, 4
    node_dim, net_dim = 8, 6
    num_nodes, num_nets, num_vn = 32, 16, 4
    n_sink_edges = 48

    key = jax.random.PRNGKey(0)
    k_par, k_nf, k_ef, k_src, k_sn, k_se, k_b = jax.random.split(key, 7)

    params = init_dehnn_params(k_par, num_layers, emb_dim, out_dim,
                               node_dim, net_dim)

    node_features = jax.random.normal(k_nf, (num_nodes, node_dim), jnp.float32)
    net_features = jax.random.normal(k_ef, (num_nets, net_dim), jnp.float32)

    src_nodes = jax.random.randint(k_src, (num_nets,), 0, num_nodes)
    edge_index_source_to_net = jnp.stack(
        [src_nodes, jnp.arange(num_nets)]).astype(jnp.int32)

    sink_nodes = jax.random.randint(k_sn, (n_sink_edges,), 0, num_nodes)
    sink_nets = jax.random.randint(k_se, (n_sink_edges,), 0, num_nets)
    edge_index_sink_to_net = jnp.stack([sink_nodes, sink_nets]).astype(jnp.int32)

    batch = jax.random.randint(k_b, (num_nodes,), 0, num_vn).astype(jnp.int32)

    data = dict(node_features=node_features,
                net_features=net_features,
                edge_index_source_to_net=edge_index_source_to_net,
                edge_index_sink_to_net=edge_index_sink_to_net,
                batch=batch,
                num_vn=num_vn)

    nodes, ret = dehnn_forward(params, data, num_layers, emb_dim)
    jax.block_until_ready((nodes, ret))

    assert nodes.shape == (num_nodes, out_dim)
    assert ret.shape == (num_nodes, 1)
    assert bool(jnp.all(jnp.isfinite(nodes))) and bool(jnp.all(jnp.isfinite(ret)))
    print("KERNEL_OK")
</pallas_src>

<mosaic_0001>
module attributes {stable_mosaic.version = 11 : i64} {
  func.func @_mm_kernel(%arg0: i32, %arg1: i32, %arg2: i32, %arg3: memref<128x128xbf16, #tpu.memory_space<vmem>>, %arg4: memref<128x128xbf16, #tpu.memory_space<vmem>>, %arg5: memref<1x128xf32, #tpu.memory_space<vmem>>, %arg6: memref<128x128xbf16, #tpu.memory_space<vmem>>, %arg7: memref<128x128xf32, #tpu.memory_space<vmem>>) attributes {dimension_semantics = [#tpu.dimension_semantics<parallel>, #tpu.dimension_semantics<parallel>, #tpu.dimension_semantics<arbitrary>], iteration_bounds = array<i64: 1, 1, 1>, scalar_prefetch = 0 : i64, scratch_operands = 1 : i64, tpu.core_type = #tpu.core_type<tc>, window_params = [{transform_indices = @transform_0, window_bounds = array<i64: 128, 128>}, {transform_indices = @transform_1, window_bounds = array<i64: 128, 128>}, {transform_indices = @transform_2, window_bounds = array<i64: 1, 128>}, {transform_indices = @transform_3, window_bounds = array<i64: 128, 128>}]} {
    %c0 = arith.constant 0 : index
    %c0_0 = arith.constant 0 : index
    %0 = vector.load %arg3[%c0, %c0_0] : memref<128x128xbf16, #tpu.memory_space<vmem>>, vector<128x128xbf16>
    %c0_1 = arith.constant 0 : index
    %c0_2 = arith.constant 0 : index
    %1 = vector.load %arg4[%c0_1, %c0_2] : memref<128x128xbf16, #tpu.memory_space<vmem>>, vector<128x128xbf16>
    %cst = arith.constant dense<0.000000e+00> : vector<128x128xf32>
    %2 = tpu.matmul %0, %1, %cst {dimension_numbers = #tpu.dot_dimension_numbers<[1], [0], [0], [1], [0, 0, 1, 1], [], []>} : vector<128x128xbf16>, vector<128x128xbf16>, vector<128x128xf32> -> vector<128x128xf32>
    %c0_i32 = arith.constant 0 : i32
    %3 = arith.cmpi eq, %arg2, %c0_i32 : i32
    %4 = arith.extui %3 : i1 to i32
    %c0_i32_3 = arith.constant 0 : i32
    %5 = arith.cmpi ne, %4, %c0_i32_3 : i32
    scf.if %5 {
      %c0_8 = arith.constant 0 : index
      %c0_9 = arith.constant 0 : index
      %12 = vector.load %arg7[%c0_8, %c0_9] : memref<128x128xf32, #tpu.memory_space<vmem>>, vector<128x128xf32>
      tpu.vector_store %arg7[%c0_8, %c0_9], %2 {strides = array<i32>} : memref<128x128xf32, #tpu.memory_space<vmem>>, vector<128x128xf32>,
    } else {
    }
    %c0_i32_4 = arith.constant 0 : i32
    %6 = arith.cmpi ne, %arg2, %c0_i32_4 : i32
    %7 = arith.extui %6 : i1 to i32
    %c0_i32_5 = arith.constant 0 : i32
    %8 = arith.cmpi ne, %7, %c0_i32_5 : i32
    scf.if %8 {
      %c0_8 = arith.constant 0 : index
      %c0_9 = arith.constant 0 : index
      %12 = vector.load %arg7[%c0_8, %c0_9] : memref<128x128xf32, #tpu.memory_space<vmem>>, vector<128x128xf32>
      %13 = arith.addf %12, %2 : vector<128x128xf32>
      %c0_10 = arith.constant 0 : index
      %c0_11 = arith.constant 0 : index
      %14 = vector.load %arg7[%c0_10, %c0_11] : memref<128x128xf32, #tpu.memory_space<vmem>>, vector<128x128xf32>
      tpu.vector_store %arg7[%c0_10, %c0_11], %13 {strides = array<i32>} : memref<128x128xf32, #tpu.memory_space<vmem>>, vector<128x128xf32>,
    } else {
    }
    %c0_i32_6 = arith.constant 0 : i32
    %9 = arith.cmpi eq, %arg2, %c0_i32_6 : i32
    %10 = arith.extui %9 : i1 to i32
    %c0_i32_7 = arith.constant 0 : i32
    %11 = arith.cmpi ne, %10, %c0_i32_7 : i32
    scf.if %11 {
      %c0_8 = arith.constant 0 : index
      %c0_9 = arith.constant 0 : index
      %12 = vector.load %arg7[%c0_8, %c0_9] : memref<128x128xf32, #tpu.memory_space<vmem>>, vector<128x128xf32>
      %c0_10 = arith.constant 0 : index
      %c0_11 = arith.constant 0 : index
      %13 = vector.load %arg5[%c0_10, %c0_11] : memref<1x128xf32, #tpu.memory_space<vmem>>, vector<1x128xf32>
      %14 = vector.broadcast %13 : vector<1x128xf32> to vector<128x128xf32>
      %15 = arith.addf %12, %14 : vector<128x128xf32>
      %cst_12 = arith.constant 0.000000e+00 : f32
      %16 = vector.broadcast %cst_12 : f32 to vector<128x128xf32>
      %17 = arith.maximumf %15, %16 : vector<128x128xf32>
      %18 = arith.truncf %17 : vector<128x128xf32> to vector<128x128xbf16>
      %c0_13 = arith.constant 0 : index
      %c0_14 = arith.constant 0 : index
      %19 = vector.load %arg6[%c0_13, %c0_14] : memref<128x128xbf16, #tpu.memory_space<vmem>>, vector<128x128xbf16>
      tpu.vector_store %arg6[%c0_13, %c0_14], %18 {strides = array<i32>} : memref<128x128xbf16, #tpu.memory_space<vmem>>, vector<128x128xbf16>,
    } else {
    }
    return
  }
  func.func @transform_0(%arg0: i32, %arg1: i32, %arg2: i32) -> (i32, i32) {
    %c0_i32 = arith.constant 0 : i32
    return %arg0, %arg2 : i32, i32
  }
  func.func @transform_1(%arg0: i32, %arg1: i32, %arg2: i32) -> (i32, i32) {
    %c0_i32 = arith.constant 0 : i32
    return %arg2, %arg1 : i32, i32
  }
  func.func @transform_2(%arg0: i32, %arg1: i32, %arg2: i32) -> (i32, i32) {
    %c0_i32 = arith.constant 0 : i32
    %c0_i32_0 = arith.constant 0 : i32
    return %c0_i32, %arg1 : i32, i32
  }
  func.func @transform_3(%arg0: i32, %arg1: i32, %arg2: i32) -> (i32, i32) {
    %c0_i32 = arith.constant 0 : i32
    return %arg0, %arg1 : i32, i32
  }
}

</mosaic_0001>

<bundles_post_ra>
// kernel: tpu_custom_call.1
= control target key start
LH: loop header
LB: loop body
LE: loop exit
PB: predicated region body
PF: predicated region fallthrough
CT: control target
= control target key end

     0   :  { %8 = vsyncpa [#allocation4], 0  ;;  %s684_s0 = inlined_call_operand.hbm [shape: bf16[128,128], index: 0, kind: input, shape index: {}]   ;;  %s685_s1 = inlined_call_operand.hbm [shape: bf16[128,128], index: 1, kind: input, shape index: {}]   ;;  %s686_s2 = inlined_call_operand.vmem [shape: f32[1,128], index: 2, kind: input, shape index: {}]   ;;  %s687_s3 = inlined_call_operand.hbm [shape: bf16[128,128], index: 3, kind: output, shape index: {}]  }
   0x1   :  { %9 = vsyncpa [#allocation7], 0 }
   0x2   :  { %10 = vsyncpa [#allocation5], 0  ;;  %s15_s14 = sshll.u32 %s684_s0, 4  ;;  %s638_s15 = smov [#allocation3]   ;;  %s16_s14 = int_to_ptr.hbm [resolvable:$true] %s15_s14 }
   0x3   :  { %s17_s16 = sshll.u32 %s638_s15, 4  ;;  %s28_s19 = sshll.u32 %s685_s1, 4  ;;  %s18_s16 = int_to_ptr.vmem [resolvable:$true] %s17_s16  ;;  %s29_s19 = int_to_ptr.hbm [resolvable:$true] %s28_s19 }
   0x4   :  { %s639_s20 = smov 64   ;;  %s640_s21 = smov 4  }
   0x5   :  { %23 = dma.hbm_to_vmem [thread:$0]  %s16_s14, 1024, %s18_s16, [#allocation4], %s639_s20, %s639_s20, %s640_s21  }
   0x6   :  { %s641_s22 = smov [#allocation6]  }
   0x7   :  { %s30_s23 = sshll.u32 %s641_s22, 4  ;;  %s31_s23 = int_to_ptr.vmem [resolvable:$true] %s30_s23 }
   0x8   :  { %36 = dma.hbm_to_vmem [thread:$0]  %s29_s19, 1024, %s31_s23, [#allocation7], %s639_s20, %s639_s20, %s640_s21  }
   0x9   :  { %632 = dma.done.wait [#allocation4], 1024  }
   0xa   :  { %633 = vsyncadd [#allocation4], 4294966272 }
   0xb   :  { %634 = dma.done.wait [#allocation7], 1024  }
   0xc   :  { %635 = vsyncadd [#allocation7], 4294966272  ;;  %v482_v0 = vld [vmem:[#allocation6 + $0x38] sm:$0xff]  ;;  %v481_v1 = vld [vmem:[#allocation6 + $0x30] sm:$0xff]  ;;  %s389_s27 = sshll.u32 %s687_s3, 4  ;;  %s390_s27 = int_to_ptr.hbm [resolvable:$true] %s389_s27 }
   0xd   :  { %175 = vmatpush.bf16.msra.mxu0 %v482_v0  ;;  %530 = vmatpush.bf16.msra.mxu1 %v482_v0  ;;  %v480_v2 = vld [vmem:[#allocation6 + $0x28] sm:$0xff]  ;;  %v479_v3 = vld [vmem:[#allocation6 + $0x20] sm:$0xff]  ;;  %v478_v4 = vld [vmem:[#allocation6 + $0x18] sm:$0xff] }
   0xe   :  { %531 = vmatpush.bf16.msra.mxu2 %v482_v0  ;;  %532 = vmatpush.bf16.msra.mxu3 %v482_v0  ;;  %v477_v5 = vld [vmem:[#allocation6 + $0x10] sm:$0xff]  ;;  %v476_v6 = vld [vmem:[#allocation6 + $0x8] sm:$0xff]  ;;  %v475_v7 = vld [vmem:[#allocation6] sm:$0xff] }
   0xf   :  { %v467_v8 = vld [vmem:[#allocation3] sm:$0xff]  ;;  %v469_v9 = vld [vmem:[#allocation3 + $0x10] sm:$0xff]  ;;  %v468_v12 = vld [vmem:[#allocation3 + $0x8] sm:$0xff] }
  0x10   :  { %v471_v10 = vld [vmem:[#allocation3 + $0x20] sm:$0xff]  ;;  %v473_v11 = vld [vmem:[#allocation3 + $0x30] sm:$0xff]  ;;  %v470_v13 = vld [vmem:[#allocation3 + $0x18] sm:$0xff] }
  0x11   :  { %176 = vmatpush.bf16.msra.mxu0 %v481_v1  ;;  %533 = vmatpush.bf16.msra.mxu1 %v481_v1  ;;  %v472_v14 = vld [vmem:[#allocation3 + $0x28] sm:$0xff]  ;;  %v474_v15 = vld [vmem:[#allocation3 + $0x38] sm:$0xff]  ;;  %v559_v18 = vld [vmem:[%s686_s2] ss:$0 sm:$0xff]  ;;  %s642_s2 = smov [#allocation8]  }
  0x12   :  { %534 = vmatpush.bf16.msra.mxu2 %v481_v1  ;;  %535 = vmatpush.bf16.msra.mxu3 %v481_v1  ;;  %s387_s24 = sshll.u32 %s642_s2, 4  ;;  %s388_s24 = int_to_ptr.vmem [resolvable:$true] %s387_s24 }
  0x15   :  { %177 = vmatpush.bf16.msra.mxu0 %v480_v2  ;;  %536 = vmatpush.bf16.msra.mxu1 %v480_v2 }
  0x16   :  { %537 = vmatpush.bf16.msra.mxu2 %v480_v2  ;;  %538 = vmatpush.bf16.msra.mxu3 %v480_v2 }
  0x19   :  { %178 = vmatpush.bf16.msra.mxu0 %v479_v3  ;;  %539 = vmatpush.bf16.msra.mxu1 %v479_v3 }
  0x1a   :  { %540 = vmatpush.bf16.msra.mxu2 %v479_v3  ;;  %541 = vmatpush.bf16.msra.mxu3 %v479_v3 }
  0x1d   :  { %179 = vmatpush.bf16.msra.mxu0 %v478_v4  ;;  %542 = vmatpush.bf16.msra.mxu1 %v478_v4 }
  0x1e   :  { %543 = vmatpush.bf16.msra.mxu2 %v478_v4  ;;  %544 = vmatpush.bf16.msra.mxu3 %v478_v4 }
  0x21   :  { %180 = vmatpush.bf16.msra.mxu0 %v477_v5  ;;  %545 = vmatpush.bf16.msra.mxu1 %v477_v5 }
  0x22   :  { %546 = vmatpush.bf16.msra.mxu2 %v477_v5  ;;  %547 = vmatpush.bf16.msra.mxu3 %v477_v5 }
  0x25   :  { %181 = vmatpush.bf16.msra.mxu0 %v476_v6  ;;  %548 = vmatpush.bf16.msra.mxu1 %v476_v6 }
  0x26   :  { %549 = vmatpush.bf16.msra.mxu2 %v476_v6  ;;  %550 = vmatpush.bf16.msra.mxu3 %v476_v6 }
  0x29   :  { %182 = vmatpush.bf16.msra.mxu0 %v475_v7  ;;  %551 = vmatpush.bf16.msra.mxu1 %v475_v7 }
  0x2a   :  { %552 = vmatpush.bf16.msra.mxu2 %v475_v7  ;;  %553 = vmatpush.bf16.msra.mxu3 %v475_v7 }
  0x2c   :  { %183 = vmatmul.bf16.vlgmr.msra.gmra.mxu0 %v467_v8  ;;  %193 = vmatmul.bf16.vlgmr.msra.gmra.mxu1 %v469_v9 }
  0x2d   :  { %203 = vmatmul.bf16.vlgmr.msra.gmra.mxu2 %v471_v10  ;;  %213 = vmatmul.bf16.vlgmr.msra.gmra.mxu3 %v473_v11 }
  0x3c   :  { %188 = vmatmul.bf16.gmra.mxu0 %v468_v12  ;;  %198 = vmatmul.bf16.gmra.mxu1 %v470_v13 }
  0x3d   :  { %208 = vmatmul.bf16.gmra.mxu2 %v472_v14  ;;  %218 = vmatmul.bf16.gmra.mxu3 %v474_v15 }
  0xa9   :  { %v184_v16 = vpop.f32.mrf.mxu0  ;;  %v194_v17 = vpop.f32.mrf.mxu1 }
  0xaa   :  { %v319_v19 = vadd.f32 %v559_v18, %v184_v16  ;;  %v323_v20 = vadd.f32 %v559_v18, %v194_v17 }
  0xac   :  { %v335_v27 = vmax.f32 %v319_v19, 0.0  ;;  %v339_v28 = vmax.f32 %v323_v20, 0.0 }
  0xb0   :  { %v204_v21 = vpop.f32.mrf.mxu2  ;;  %v214_v22 = vpop.f32.mrf.mxu3 }
  0xb1   :  { %v186_v23 = vpop.f32.mrf.mxu0  ;;  %v196_v24 = vpop.f32.mrf.mxu1  ;;  %v327_v33 = vadd.f32 %v559_v18, %v204_v21  ;;  %v331_v34 = vadd.f32 %v559_v18, %v214_v22 }
  0xb2   :  { %v320_v25 = vadd.f32 %v559_v18, %v186_v23  ;;  %v324_v26 = vadd.f32 %v559_v18, %v196_v24 }
  0xb3   :  { %v343_v41 = vmax.f32 %v327_v33, 0.0  ;;  %v347_v42 = vmax.f32 %v331_v34, 0.0 }
  0xb4   :  { %v336_v29 = vmax.f32 %v320_v25, 0.0  ;;  %v340_v30 = vmax.f32 %v324_v26, 0.0 }
  0xb6   :  { %v486_v31 = vpack.c.bf16 %v336_v29, %v335_v27  ;;  %v496_v32 = vpack.c.bf16 %v340_v30, %v339_v28 }
  0xb8   :  { %487 = vst [vmem:[#allocation8] sm:$0xff] %v486_v31   ;;  %v206_v35 = vpop.f32.mrf.mxu2  ;;  %v216_v36 = vpop.f32.mrf.mxu3 }
  0xb9   :  { %524 = vst [vmem:[#allocation8 + $0x10] sm:$0xff] %v496_v32   ;;  %v328_v37 = vadd.f32 %v559_v18, %v206_v35  ;;  %v332_v38 = vadd.f32 %v559_v18, %v216_v36  ;;  %v189_v39 = vpop.f32.mrf.mxu0  ;;  %v199_v40 = vpop.f32.mrf.mxu1 }
  0xba   :  { %v321_v47 = vadd.f32 %v559_v18, %v189_v39  ;;  %v325_v48 = vadd.f32 %v559_v18, %v199_v40 }
  0xbb   :  { %v344_v43 = vmax.f32 %v328_v37, 0.0  ;;  %v348_v44 = vmax.f32 %v332_v38, 0.0 }
  0xbc   :  { %v337_v55 = vmax.f32 %v321_v47, 0.0  ;;  %v341_v56 = vmax.f32 %v325_v48, 0.0 }
  0xbd   :  { %v506_v45 = vpack.c.bf16 %v344_v43, %v343_v41  ;;  %v516_v46 = vpack.c.bf16 %v348_v44, %v347_v42 }
  0xbf   :  { %526 = vst [vmem:[#allocation8 + $0x20] sm:$0xff] %v506_v45  }
  0xc0   :  { %528 = vst [vmem:[#allocation8 + $0x30] sm:$0xff] %v516_v46   ;;  %v209_v49 = vpop.f32.mrf.mxu2  ;;  %v219_v50 = vpop.f32.mrf.mxu3 }
  0xc1   :  { %v191_v51 = vpop.f32.mrf.mxu0  ;;  %v201_v52 = vpop.f32.mrf.mxu1  ;;  %v329_v61 = vadd.f32 %v559_v18, %v209_v49  ;;  %v333_v62 = vadd.f32 %v559_v18, %v219_v50 }
  0xc2   :  { %v322_v53 = vadd.f32 %v559_v18, %v191_v51  ;;  %v326_v54 = vadd.f32 %v559_v18, %v201_v52 }
  0xc3   :  { %v345_v3 = vmax.f32 %v329_v61, 0.0  ;;  %v349_v4 = vmax.f32 %v333_v62, 0.0 }
  0xc4   :  { %v338_v57 = vmax.f32 %v322_v53, 0.0  ;;  %v342_v58 = vmax.f32 %v326_v54, 0.0 }
  0xc6   :  { %v491_v59 = vpack.c.bf16 %v338_v57, %v337_v55  ;;  %v501_v60 = vpack.c.bf16 %v342_v58, %v341_v56 }
  0xc8   :  { %523 = vst [vmem:[#allocation8 + $0x8] sm:$0xff] %v491_v59   ;;  %v211_v63 = vpop.f32.mrf.mxu2  ;;  %v221_v0 = vpop.f32.mrf.mxu3 }
  0xc9   :  { %525 = vst [vmem:[#allocation8 + $0x18] sm:$0xff] %v501_v60   ;;  %v330_v1 = vadd.f32 %v559_v18, %v211_v63  ;;  %v334_v2 = vadd.f32 %v559_v18, %v221_v0 }
  0xcb   :  { %v346_v5 = vmax.f32 %v330_v1, 0.0  ;;  %v350_v6 = vmax.f32 %v334_v2, 0.0 }
  0xcd   :  { %v511_v7 = vpack.c.bf16 %v346_v5, %v345_v3  ;;  %v521_v8 = vpack.c.bf16 %v350_v6, %v349_v4 }
  0xcf   :  { %527 = vst [vmem:[#allocation8 + $0x28] sm:$0xff] %v511_v7  }
  0xd0   :  { %529 = vst [vmem:[#allocation8 + $0x38] sm:$0xff] %v521_v8  }
  0xd1   :  { %395 = dma.vmem_to_hbm [thread:$0]  %s388_s24, 1024, %s390_s27, [#allocation5], %s639_s20, %s639_s20, %s640_s21  }
  0xd2   :  { %636 = dma.done.wait [#allocation5], 1024  }
  0xd3   :  { %637 = vsyncadd [#allocation5], 4294966272 }
  0xd4   :  { %400 = vsyncpa [#allocation4], 1 }
  0xd5   :  { %401 = vsyncpa [#allocation7], 1 }
  0xd6   :  { %402 = vsyncpa [#allocation5], 1 }

</bundles_post_ra>
